<compile_context>
chip_gen: v7x
topology: tpu7x:2x2x1
jax: 0.10.0
libtpu: 0.0.40
codegen_flags: <defaults>
</compile_context>

<pallas_src>
import jax
import jax.numpy as jnp
from jax import lax
from jax.experimental import pallas as pl
from jax.experimental.pallas import tpu as pltpu


def mlp_kernel(x_ref, w_ref, b_ref, o_ref):
    # x_ref: [B, K] f32, w_ref: [tn, K] bf16 (PyTorch [out, in] layout),
    # b_ref: [1, tn] f32, o_ref: [B, tn] f32.
    x = x_ref[...].astype(jnp.bfloat16)          # tiny; cast in-kernel
    acc = lax.dot_general(
        x, w_ref[...],
        dimension_numbers=(((1,), (1,)), ((), ())),   # contract K on both -> [B, tn]
        preferred_element_type=jnp.float32)
    # fused bias + ReLU, lane-dense store
    o_ref[...] = jnp.maximum(acc + b_ref[...], 0.0).astype(o_ref.dtype)


def mlp_forward(x, w, b, *, tn=256):
    """relu(x @ w.T + b).

    x: [B, K] float32, w: [N, K] (PyTorch Linear layout, f32 or bf16), b: [N].
    Returns [B, N] float32.
    """
    B, K = x.shape
    N, Kw = w.shape
    assert Kw == K, (Kw, K)
    # Guards for the (8, 128) tiling rule (B is always a full M block here,
    # but keep it sublane-friendly; N split must stay lane-dense).
    assert B % 8 == 0, f"batch {B} must be a multiple of 8"
    assert tn % 128 == 0 and N % tn == 0, (N, tn)

    # One-time cast in a real model (param-load time); no-op if already bf16.
    if w.dtype != jnp.bfloat16:
        w = w.astype(jnp.bfloat16)
    b2 = b.astype(jnp.float32).reshape(1, N)

    grid = (N // tn,)   # 2 steps for N=512: one per TC on v7x, cheap on v5e/v6e

    return pl.pallas_call(
        mlp_kernel,
        out_shape=jax.ShapeDtypeStruct((B, N), jnp.float32),
        grid_spec=pltpu.PrefetchScalarGridSpec(
            num_scalar_prefetch=0,
            grid=grid,
            in_specs=[
                pl.BlockSpec((B, K), lambda j: (0, 0)),    # full x every step (64 KiB)
                pl.BlockSpec((tn, K), lambda j: (j, 0)),   # weight slab, [out, in] layout
                pl.BlockSpec((1, tn), lambda j: (0, j)),   # bias slice
            ],
            out_specs=pl.BlockSpec((B, tn), lambda j: (0, j)),
        ),
        compiler_params=pltpu.CompilerParams(
            dimension_semantics=("parallel",)),
    )(x, w, b2)


def ref_forward_bf16(x, w, b):
    # Reference with the same bf16 operand cast / f32 accumulation as the kernel.
    xb = x.astype(jnp.bfloat16)
    wb = w.astype(jnp.bfloat16)
    acc = jnp.dot(xb, wb.T, preferred_element_type=jnp.float32)
    return jax.nn.relu(acc + b[None, :].astype(jnp.float32))


if __name__ == "__main__":
    # Module fixes in/out features: Linear(1024, 512). Batch kept small.
    B, IN, OUT = 16, 1024, 512

    key = jax.random.PRNGKey(0)
    kx, kw, kb = jax.random.split(key, 3)
    x = jax.random.normal(kx, (B, IN), dtype=jnp.float32)
    # PyTorch-style Linear weight [out_features, in_features]
    w_f32 = (0.03 * jax.random.normal(kw, (OUT, IN))).astype(jnp.float32)
    b = (0.03 * jax.random.normal(kb, (OUT,))).astype(jnp.float32)

    # One-time weight cast (stands in for param-load-time cast in a real model).
    w_bf16 = w_f32.astype(jnp.bfloat16)

    out = jax.block_until_ready(mlp_forward(x, w_bf16, b))
    ref = jax.block_until_ready(ref_forward_bf16(x, w_f32, b))

    assert out.shape == (B, OUT), out.shape
    abs_err = jnp.max(jnp.abs(out - ref))
    rel_err = float(abs_err / (jnp.max(jnp.abs(ref)) + 1e-6))
    assert float(abs_err) < 2e-2 and rel_err < 2e-2, (
        f"mismatch vs bf16 reference: max abs err = {float(abs_err)}, rel = {rel_err}")
    print("KERNEL_OK")
</pallas_src>

<mosaic_0001>
module attributes {stable_mosaic.version = 11 : i64} {
  func.func @mlp_kernel(%arg0: i32, %arg1: memref<16x1024xf32, #tpu.memory_space<vmem>>, %arg2: memref<256x1024xbf16, #tpu.memory_space<vmem>>, %arg3: memref<1x256xf32, #tpu.memory_space<vmem>>, %arg4: memref<16x256xf32, #tpu.memory_space<vmem>>) attributes {dimension_semantics = [#tpu.dimension_semantics<parallel>], iteration_bounds = array<i64: 2>, scalar_prefetch = 0 : i64, scratch_operands = 0 : i64, tpu.core_type = #tpu.core_type<tc>, window_params = [{pipeline_mode = #tpu.pipeline_mode<synchronous>, transform_indices = @transform_0, window_bounds = array<i64: 16, 1024>}, {transform_indices = @transform_1, window_bounds = array<i64: 256, 1024>}, {transform_indices = @transform_2, window_bounds = array<i64: 1, 256>}, {transform_indices = @transform_3, window_bounds = array<i64: 16, 256>}]} {
    %c0 = arith.constant 0 : index
    %c0_0 = arith.constant 0 : index
    %0 = vector.load %arg1[%c0, %c0_0] : memref<16x1024xf32, #tpu.memory_space<vmem>>, vector<16x1024xf32>
    %1 = arith.truncf %0 : vector<16x1024xf32> to vector<16x1024xbf16>
    %c0_1 = arith.constant 0 : index
    %c0_2 = arith.constant 0 : index
    %2 = vector.load %arg2[%c0_1, %c0_2] : memref<256x1024xbf16, #tpu.memory_space<vmem>>, vector<256x1024xbf16>
    %cst = arith.constant dense<0.000000e+00> : vector<16x256xf32>
    %3 = tpu.matmul %1, %2, %cst {dimension_numbers = #tpu.dot_dimension_numbers<[1], [1], [0], [0], [0, 0, 1, 0], [], []>} : vector<16x1024xbf16>, vector<256x1024xbf16>, vector<16x256xf32> -> vector<16x256xf32>
    %c0_3 = arith.constant 0 : index
    %c0_4 = arith.constant 0 : index
    %4 = vector.load %arg3[%c0_3, %c0_4] : memref<1x256xf32, #tpu.memory_space<vmem>>, vector<1x256xf32>
    %5 = vector.broadcast %4 : vector<1x256xf32> to vector<16x256xf32>
    %6 = arith.addf %3, %5 : vector<16x256xf32>
    %cst_5 = arith.constant 0.000000e+00 : f32
    %7 = vector.broadcast %cst_5 : f32 to vector<16x256xf32>
    %8 = arith.maximumf %6, %7 : vector<16x256xf32>
    %c0_6 = arith.constant 0 : index
    %c0_7 = arith.constant 0 : index
    %9 = vector.load %arg4[%c0_6, %c0_7] : memref<16x256xf32, #tpu.memory_space<vmem>>, vector<16x256xf32>
    tpu.vector_store %arg4[%c0_6, %c0_7], %8 {strides = array<i32>} : memref<16x256xf32, #tpu.memory_space<vmem>>, vector<16x256xf32>,
    return
  }
  func.func @transform_0(%arg0: i32) -> (i32, i32) {
    %c0_i32 = arith.constant 0 : i32
    %c0_i32_0 = arith.constant 0 : i32
    %c0_i32_1 = arith.constant 0 : i32
    return %c0_i32, %c0_i32_0 : i32, i32
  }
  func.func @transform_1(%arg0: i32) -> (i32, i32) {
    %c0_i32 = arith.constant 0 : i32
    %c0_i32_0 = arith.constant 0 : i32
    return %arg0, %c0_i32 : i32, i32
  }
  func.func @transform_2(%arg0: i32) -> (i32, i32) {
    %c0_i32 = arith.constant 0 : i32
    %c0_i32_0 = arith.constant 0 : i32
    return %c0_i32, %arg0 : i32, i32
  }
  func.func @transform_3(%arg0: i32) -> (i32, i32) {
    %c0_i32 = arith.constant 0 : i32
    %c0_i32_0 = arith.constant 0 : i32
    return %c0_i32, %arg0 : i32, i32
  }
}

</mosaic_0001>

<bundles_post_ra>
// kernel: tpu_custom_call.1
= control target key start
LH: loop header
LB: loop body
LE: loop exit
PB: predicated region body
PF: predicated region fallthrough
CT: control target
= control target key end

     0   :  { %8 = vsyncpa [#allocation3], 0  ;;  %s2043_s0 = inlined_call_operand.hbm [shape: f32[16,1024], index: 0, kind: input, shape index: {}]   ;;  %s2044_s1 = inlined_call_operand.hbm [shape: bf16[512,1024], index: 1, kind: input, shape index: {}]   ;;  %s2045_s2 = inlined_call_operand.vmem [shape: f32[1,512], index: 2, kind: input, shape index: {}]   ;;  %s2046_s3 = inlined_call_operand.hbm [shape: f32[16,512], index: 3, kind: output, shape index: {}]  }
   0x1   :  { %9 = vsyncpa [#allocation6], 0 }
   0x2   :  { %11 = vsyncpa [#allocation6 + $0x1], 0 }
   0x3   :  { %12 = vsyncpa [#allocation4], 0 }
   0x4   :  { %14 = vsyncpa [#allocation4 + $0x1], 0  ;;  %s1707_s12 = smov 0   ;;  %s1709_s13 = smov 0  }
   0x5   :  { %s1711_s14 = smov 0   ;;  %s1713_s15 = smov 0  }
   0x6 LB: > { %s1728_s16 = sadd.s32 4294967295, %s1675_s15   ;;  %s1318_s17 = sadd.s32 4294967294, %s1675_s15   ;;  %s1675_s15 = sphi %s1713_s15, %s2066_s15   ;;  %s1671_s14 = sphi %s1711_s14, %s2065_s14   ;;  %s1667_s13 = sphi %s1709_s13, %s2064_s13   ;;  %s1663_s12 = sphi %s1707_s12, %s2063_s12  }
   0x7   : > { %p61_p0 = scmp.ne.s32.totalorder %s1667_s13, %s1663_s12  ;;  %p2047_p1 = scmp.eq.s32.totalorder %s1728_s16, 0 }
   0x8   : > { %p117_p3 = scmp.eq.s32.totalorder %s1318_s17, 1  ;;  %p1319_p5 = scmp.ge.s32.totalorder %s1675_s15, 1 }
   0x9   : > { %p1737_p4 = por %p2047_p1, %p61_p0  ;;  %p124_p7 = scmp.lt.s32.totalorder %s1675_s15, 3 }
   0xa   : > { %p1742_p6 = por %p117_p3, %p61_p0  ;;  %s1677_s21 = smov [#allocation2]  }
   0xb   : > { %s2050_s18 = scalar_select %p1737_p4, 1, 0 }
   0xc   : > { %s2051_s19 = scalar_select %p1742_p6, 1, 0 }
   0xd   : > { %p1747_p8 = pnand %p1319_p5, %p124_p7  ;;  %s136_s22 = sshll.u32 %s1677_s21, 4  ;;  %s1751_s22 = int_to_ptr.vmem [resolvable:$true] %s136_s22 }
   0xe   : > { %s1763_s24 = sadd.s32 1, %s1675_s15   ;;  %s48_s25 = sadd.s32 1, %s1671_s14 }
   0xf   : > { %s2052_s20 = scalar_select %p1747_p8, 1, 0 }
  0x10   : > { %p1491_p9 = pneg %p1747_p8  ;;  %s45_s26 = ssub.s32 %s1675_s15, %s1763_s24 }
  0x11   : > { %s1547_s29 = scalar_lea.hbm %s2043_s0, 2048 }
  0x12   : > { %p1758_p11 = pnand %p1491_p9, %p2047_p1  ;;  %p1548_p12 = scmp.ne.s32.totalorder %s2043_s0, %s1547_s29 }
  0x13   : > { %p1554_p5 = scmp.lt.u32.totalorder %s1547_s29, %s2043_s0 }
  0x14   : > { %p1549_p13 = pneg %p1758_p11 }
  0x16   : > { %p1550_p0 = pnand %p1549_p13, %p1548_p12 }
  0x18   : > { %p1551_p3 = pneg %p1550_p0 }
  0x1a   : > { %p1556_p7 = pnand %p1554_p5, %p1551_p3 }
  0x1c   : > { %1559 = shalt.err (!%p1556_p7)
}
  0x1d   : > { %s1560_s7 = scalar_lea.vmem %s1751_s22, 2048  ;;  %p1568_p2 = scmp.lt.s32.totalorder %s1751_s22, %s1751_s22 }
  0x1e   : > { %p1561_p9 = scmp.ne.s32.totalorder %s1751_s22, %s1560_s7  ;;  %p1569_p6 = scmp.lt.s32.totalorder %s1560_s7, %s1560_s7 }
  0x20   : > { %p1563_p10 = pnand %p1561_p9, %p1549_p13  ;;  %p1570_p4 = por %p1569_p6, %p1568_p2 }
  0x22   : > { %p1564_p1 = pneg %p1563_p10 }
  0x24   : > { %p1571_p8 = pnand %p1570_p4, %p1564_p1 }
  0x26   : > { %1574 = shalt.err (!%p1571_p8)
}
  0x27   : > { %s1678_s8 = smov 1024   ;;  %s1679_s9 = smov 64  }
  0x28   : > { %1494 = dma.hbm_to_vmem [thread:$0]  (!%p1758_p11), %s2043_s0, 2048, %s1751_s22, [#allocation3], %s1678_s8, %s1678_s8, %s1679_s9  }
  0x29   : > { %p46_p2 = scmp.eq.s32.totalorder %s45_s26, 0  ;;  %p55_p1 = scmp.ne.s32.totalorder %s1671_s14, %s1667_s13 }
  0x2a   : > { %p56_p4 = scmp.eq.s32.totalorder %s1675_s15, 0  ;;  %p1504_p6 = scmp.lt.s32.totalorder %s1675_s15, 2 }
  0x2b   : > { %s1794_s17 = scalar_select %p46_p2, %s1671_s14, %s48_s25  }
  0x2c   : > { %p57_p8 = por %p56_p4, %p55_p1  ;;  %p2054_p10 = scmp.eq.s32.totalorder %s1728_s16, 1 }
  0x2d   : > { %s150_s27 = sand.u32 1, %s1671_s14   ;;  %s1465_s28 = sshll.u32 %s1675_s15, 14 }
  0x2e   : > { %p1798_p12 = por %p2054_p10, %p55_p1  ;;  %s1322_s29 = sshll.u32 %s150_s27, 10 }
  0x2f   : > { %s1807_s4 = scalar_lea.hbm %s2044_s1, %s1465_s28  ;;  %s154_s22 = scalar_lea.vmem [#allocation5], %s1322_s29 }
  0x30   : > { %s162_s25 = sshll.u32 %s154_s22, 4  ;;  %p1809_p11 = pnand %p1504_p6, %p57_p8  ;;  %s1813_s25 = int_to_ptr.vmem [resolvable:$true] %s162_s25 }
  0x31   : > { %s1815_s5 = scalar_lea.sflag [#allocation6], %s150_s27  ;;  %s1575_s6 = scalar_lea.hbm %s1807_s4, 16384 }
  0x32   : > { %p1576_p13 = scmp.ne.s32.totalorder %s1807_s4, %s1575_s6  ;;  %p1577_p0 = pneg %p1809_p11 }
  0x33   : > { %s1580_s9 = scalar_lea.hbm %s2044_s1, 32768  ;;  %p1581_p7 = scmp.lt.u32.totalorder %s1807_s4, %s2044_s1 }
  0x34   : > { %p1578_p3 = pnand %p1577_p0, %p1576_p13  ;;  %p1582_p9 = scmp.lt.u32.totalorder %s1580_s9, %s1575_s6 }
  0x35   : > { %p1584_p1 = scmp.lt.u32.totalorder %s1575_s6, %s1807_s4 }
  0x36   : > { %p1579_p5 = pneg %p1578_p3  ;;  %p1583_p2 = por %p1582_p9, %p1581_p7 }
  0x38   : > { %p1585_p4 = por %p1584_p1, %p1583_p2 }
  0x3a   : > { %p1586_p6 = pnand %p1585_p4, %p1579_p5 }
  0x3c   : > { %1589 = shalt.err (!%p1586_p6)
}
  0x3d   : > { %s1590_s27 = scalar_lea.vmem %s1813_s25, 16384  ;;  %s1680_s28 = smov [#allocation5]  }
  0x3e   : > { %p1591_p8 = scmp.ne.s32.totalorder %s1813_s25, %s1590_s27  ;;  %s1595_s29 = sshll.u32 %s1680_s28, 4  ;;  %s1596_s29 = int_to_ptr.vmem [resolvable:$false] %s1595_s29 }
  0x3f   : > { %s1597_s23 = scalar_lea.vmem %s1596_s29, 32768  ;;  %p1598_p3 = scmp.lt.s32.totalorder %s1813_s25, %s1596_s29 }
  0x40   : > { %p1593_p10 = pnand %p1591_p8, %p1577_p0  ;;  %p1599_p7 = scmp.lt.s32.totalorder %s1597_s23, %s1590_s27 }
  0x42   : > { %p1594_p13 = pneg %p1593_p10  ;;  %p1600_p9 = por %p1599_p7, %p1598_p3 }
  0x44   : > { %p1601_p2 = pnand %p1600_p9, %p1594_p13 }
  0x46   : > { %1604 = shalt.err (!%p1601_p2)
}
  0x47   : > { %s1681_s30 = smov 512   ;;  %s1682_s22 = smov 32  }
  0x48   : > { %1498 = dma.hbm_to_vmem [thread:$0]  (!%p1809_p11), %s1807_s4, 16384, %s1813_s25, %s1815_s5, %s1681_s30, %s1681_s30, %s1682_s22  }
  0x49   : > { %p2057_p0 = scmp.ne.s32.totalorder %s2052_s20, 0 }
  0x4a   : > { %p2058_p5 = scmp.eq.s32.totalorder (!%p2057_p0), %s1728_s16, 0 }
  0x4b   : > { %182 = sbr.rel (%p2057_p0) target bundleno = 584 (0x248), region = 32 }
  0x52   : > { %1650 = dma.done.wait (%p2058_p5), [#allocation3], 2048   ;;  %p2059_p1 = pmov %p2058_p5 }
  0x53   : > { %s1850_s6 = sand.u32 1, %s1667_s13   ;;  %p2060_p11 = scmp.ne.s32.totalorder %s2050_s18, 0 }
  0x54   : > { %1652 = vsyncadd (%p2059_p1), [#allocation3], 4294965248  ;;  %s1328_s7 = sshll.u32 %s1850_s6, 10  ;;  %s189_s8 = scalar_lea.sflag [#allocation6], %s1850_s6 }
  0x55   : > { %s1854_s9 = scalar_lea.vmem [#allocation5], %s1328_s7 }
  0x56   : > { %1654 = dma.done.wait (%p2060_p11), %s189_s8, 16384  }
  0x57   : > { %1656 = vsyncadd (%p2060_p11), %s189_s8, 4294950912  ;;  %v250_v0 = vld [vmem:[%s1854_s9] sm:$0xff]  ;;  %v252_v2 = vld [vmem:[%s1854_s9 + $0x10] sm:$0xff]  ;;  %s1330_s18 = sshll.u32 %s1728_s16, 1  ;;  %s1329_s26 = sshll.u32 %s1850_s6, 5 }
  0x58   : > { %v254_v1 = vld [vmem:[%s1854_s9 + $0x20] sm:$0xff]  ;;  %v256_v4 = vld [vmem:[%s1854_s9 + $0x30] sm:$0xff]  ;;  %v227_v30 = vld [vmem:[#allocation2 + $0x8] sm:$0xff]  ;;  %p221_p4 = scmp.lt.s32.totalorder %s1330_s18, 3  ;;  %s218_s5 = scalar_lea.vmem [#allocation7], %s1329_s26 }
  0x59   : > { %v1332_v3 = vcombine.high %v250_v0, %v254_v1  ;;  %v1331_v5 = vcombine.low %v250_v0, %v254_v1  ;;  %v258_v6 = vld [vmem:[%s1854_s9 + $0x40] sm:$0xff]  ;;  %v1336_v8 = vcombine.high %v252_v2, %v256_v4  ;;  %v1335_v9 = vcombine.low %v252_v2, %v256_v4  ;;  %v260_v11 = vld [vmem:[%s1854_s9 + $0x50] sm:$0xff]  ;;  %v235_v31 = vld [vmem:[#allocation2 + $0x48] sm:$0xff]  ;;  %s1224_s10 = sshll.u32 %s218_s5, 4  ;;  %s1466_s11 = sshll.u32 %s1728_s16, 8  ;;  %s1994_s10 = int_to_ptr.vmem [resolvable:$true] %s1224_s10 }
  0x5a   : > { %v262_v7 = vld [vmem:[%s1854_s9 + $0x60] sm:$0xff]  ;;  %v264_v12 = vld [vmem:[%s1854_s9 + $0x70] sm:$0xff]  ;;  %v243_v34 = vpack.c.bf16 %v235_v31, %v227_v30  ;;  %v231_v35 = vld [vmem:[#allocation2 + $0x28] sm:$0xff]  ;;  %s2068_s18 = smov (!%p221_p4, %s1330_s18), 3  ;;  %s1999_s29 = scalar_lea.hbm %s2046_s3, %s1466_s11 }
  0x5b   : > { %v1340_v10 = vcombine.high %v258_v6, %v262_v7  ;;  %1030 = vmatprep.subr.bf16.mxu1 %v1332_v3  ;;  %v1344_v13 = vcombine.high %v260_v11, %v264_v12  ;;  %1116 = vmatprep.subr.bf16.mxu0 %v1336_v8  ;;  %v266_v14 = vld [vmem:[%s1854_s9 + $0x80] sm:$0xff]  ;;  %v268_v16 = vld [vmem:[%s1854_s9 + $0x90] sm:$0xff]  ;;  %v1339_v18 = vcombine.low %v258_v6, %v262_v7  ;;  %v239_v38 = vld [vmem:[#allocation2 + $0x68] sm:$0xff]  ;;  %s223_s25 = scalar_lea.vmem %s2045_s2, %s2068_s18  ;;  %s1211_s16 = scalar_lea.sflag [#allocation4], %s1850_s6 }
  0x5c   : > { %1031 = vmatpush1.bf16.xpose.msra.mxu1 %v1331_v5  ;;  %1117 = vmatpush1.bf16.xpose.msra.mxu0 %v1335_v9  ;;  %v270_v15 = vld [vmem:[%s1854_s9 + $0xa0] sm:$0xff]  ;;  %v272_v17 = vld [vmem:[%s1854_s9 + $0xb0] sm:$0xff]  ;;  %v1343_v19 = vcombine.low %v260_v11, %v264_v12  ;;  %v247_v40 = vpack.c.bf16 %v239_v38, %v231_v35  ;;  %s1605_s23 = scalar_lea.vmem %s1994_s10, 512  ;;  %s1683_s30 = smov [#allocation7]  }
  0x5d   : > { %1032 = vmatprep.subr.bf16.mxu1 %v1340_v10  ;;  %1118 = vmatprep.subr.bf16.mxu0 %v1344_v13  ;;  %v1348_v20 = vcombine.high %v266_v14, %v270_v15  ;;  %v1352_v21 = vcombine.high %v268_v16, %v272_v17  ;;  %v274_v22 = vld [vmem:[%s1854_s9 + $0xc0] sm:$0xff]  ;;  %v276_v24 = vld [vmem:[%s1854_s9 + $0xd0] sm:$0xff]  ;;  %v1347_v26 = vcombine.low %v266_v14, %v270_v15  ;;  %p1606_p6 = scmp.ne.s32.totalorder %s1994_s10, %s1605_s23  ;;  %s1609_s22 = sshll.u32 %s1683_s30, 4  ;;  %s1610_s22 = int_to_ptr.vmem [resolvable:$false] %s1609_s22 }
  0x5e   : > { %v278_v23 = vld [vmem:[%s1854_s9 + $0xe0] sm:$0xff]  ;;  %v280_v25 = vld [vmem:[%s1854_s9 + $0xf0] sm:$0xff]  ;;  %v1351_v27 = vcombine.low %v268_v16, %v272_v17  ;;  %1062 = vmatprep.mubr.bf16.mxu1 %v243_v34  ;;  %1148 = vmatprep.mubr.bf16.mxu0 %v247_v40  ;;  %s1611_s7 = scalar_lea.vmem %s1610_s22, 1024  ;;  %p1612_p13 = scmp.lt.s32.totalorder %s1994_s10, %s1610_s22 }
  0x5f   : > { %v1356_v28 = vcombine.high %v274_v22, %v278_v23  ;;  %v1360_v29 = vcombine.high %v276_v24, %v280_v25  ;;  %v282_v32 = vld [vmem:[%s1854_s9 + $0x100] sm:$0xff]  ;;  %v284_v36 = vld [vmem:[%s1854_s9 + $0x110] sm:$0xff]  ;;  %v1355_v39 = vcombine.low %v274_v22, %v278_v23  ;;  %v1359_v41 = vcombine.low %v276_v24, %v280_v25  ;;  %p1607_p8 = pnand %p1606_p6, %p1798_p12  ;;  %p1613_p3 = scmp.lt.s32.totalorder %s1611_s7, %s1605_s23 }
  0x60   : > { %v286_v33 = vld [vmem:[%s1854_s9 + $0x120] sm:$0xff]  ;;  %v288_v37 = vld [vmem:[%s1854_s9 + $0x130] sm:$0xff] }
  0x61   : > { %v1364_v42 = vcombine.high %v282_v32, %v286_v33  ;;  %v1368_v43 = vcombine.high %v284_v36, %v288_v37  ;;  %v290_v44 = vld [vmem:[%s1854_s9 + $0x140] sm:$0xff]  ;;  %v292_v46 = vld [vmem:[%s1854_s9 + $0x150] sm:$0xff]  ;;  %v1363_v48 = vcombine.low %v282_v32, %v286_v33  ;;  %v1367_v49 = vcombine.low %v284_v36, %v288_v37  ;;  %p1608_p10 = pneg %p1607_p8  ;;  %p1614_p7 = por %p1613_p3, %p1612_p13 }
  0x62   : > { %v294_v45 = vld [vmem:[%s1854_s9 + $0x160] sm:$0xff]  ;;  %v296_v47 = vld [vmem:[%s1854_s9 + $0x170] sm:$0xff] }
  0x63   : > { %v1372_v50 = vcombine.high %v290_v44, %v294_v45  ;;  %v1376_v51 = vcombine.high %v292_v46, %v296_v47  ;;  %v298_v52 = vld [vmem:[%s1854_s9 + $0x180] sm:$0xff]  ;;  %v300_v54 = vld [vmem:[%s1854_s9 + $0x190] sm:$0xff]  ;;  %v1371_v56 = vcombine.low %v290_v44, %v294_v45  ;;  %v1375_v57 = vcombine.low %v292_v46, %v296_v47  ;;  %p1615_p9 = pnand %p1614_p7, %p1608_p10 }
  0x64   : > { %1033 = vmatpush1.bf16.xpose.msra.mxu1 %v1339_v18  ;;  %1119 = vmatpush1.bf16.xpose.msra.mxu0 %v1343_v19  ;;  %v302_v53 = vld [vmem:[%s1854_s9 + $0x1a0] sm:$0xff]  ;;  %v304_v55 = vld [vmem:[%s1854_s9 + $0x1b0] sm:$0xff] }
  0x65   : > { %1034 = vmatprep.subr.bf16.mxu1 %v1348_v20  ;;  %1120 = vmatprep.subr.bf16.mxu0 %v1352_v21  ;;  %v1380_v58 = vcombine.high %v298_v52, %v302_v53  ;;  %v1384_v59 = vcombine.high %v300_v54, %v304_v55  ;;  %v306_v60 = vld [vmem:[%s1854_s9 + $0x1c0] sm:$0xff]  ;;  %v308_v62 = vld [vmem:[%s1854_s9 + $0x1d0] sm:$0xff]  ;;  %v1379_v0 = vcombine.low %v298_v52, %v302_v53 }
  0x66   : > { %v310_v61 = vld [vmem:[%s1854_s9 + $0x1e0] sm:$0xff]  ;;  %v312_v63 = vld [vmem:[%s1854_s9 + $0x1f0] sm:$0xff]  ;;  %v1383_v1 = vcombine.low %v300_v54, %v304_v55 }
  0x67   : > { %v1388_v2 = vcombine.high %v306_v60, %v310_v61  ;;  %v1392_v3 = vcombine.high %v308_v62, %v312_v63  ;;  %v314_v4 = vld [vmem:[%s1854_s9 + $0x200] sm:$0xff]  ;;  %v316_v6 = vld [vmem:[%s1854_s9 + $0x210] sm:$0xff]  ;;  %v1387_v8 = vcombine.low %v306_v60, %v310_v61  ;;  %v1391_v9 = vcombine.low %v308_v62, %v312_v63 }
  0x68   : > { %v318_v5 = vld [vmem:[%s1854_s9 + $0x220] sm:$0xff]  ;;  %v320_v7 = vld [vmem:[%s1854_s9 + $0x230] sm:$0xff] }
  0x69   : > { %v1396_v10 = vcombine.high %v314_v4, %v318_v5  ;;  %v1400_v11 = vcombine.high %v316_v6, %v320_v7  ;;  %v322_v12 = vld [vmem:[%s1854_s9 + $0x240] sm:$0xff]  ;;  %v324_v14 = vld [vmem:[%s1854_s9 + $0x250] sm:$0xff]  ;;  %v1395_v16 = vcombine.low %v314_v4, %v318_v5  ;;  %v1399_v17 = vcombine.low %v316_v6, %v320_v7  ;;  %v251_v4 = vld [vmem:[%s1854_s9 + $0x8] sm:$0xff] }
  0x6a   : > { %v326_v13 = vld [vmem:[%s1854_s9 + $0x260] sm:$0xff]  ;;  %v328_v15 = vld [vmem:[%s1854_s9 + $0x270] sm:$0xff]  ;;  %v255_v5 = vld [vmem:[%s1854_s9 + $0x28] sm:$0xff] }
  0x6b   : > { %v1404_v18 = vcombine.high %v322_v12, %v326_v13  ;;  %v1408_v19 = vcombine.high %v324_v14, %v328_v15  ;;  %v330_v20 = vld [vmem:[%s1854_s9 + $0x280] sm:$0xff]  ;;  %v332_v22 = vld [vmem:[%s1854_s9 + $0x290] sm:$0xff]  ;;  %v1403_v24 = vcombine.low %v322_v12, %v326_v13  ;;  %v1407_v25 = vcombine.low %v324_v14, %v328_v15  ;;  %v253_v6 = vld [vmem:[%s1854_s9 + $0x18] sm:$0xff] }
  0x6c   : > { %1035 = vmatpush1.bf16.xpose.msra.mxu1 %v1347_v26  ;;  %1121 = vmatpush1.bf16.xpose.msra.mxu0 %v1351_v27  ;;  %v334_v21 = vld [vmem:[%s1854_s9 + $0x2a0] sm:$0xff]  ;;  %v336_v23 = vld [vmem:[%s1854_s9 + $0x2b0] sm:$0xff]  ;;  %v257_v7 = vld [vmem:[%s1854_s9 + $0x38] sm:$0xff] }
  0x6d   : > { %1036 = vmatprep.subr.bf16.mxu1 %v1356_v28  ;;  %1122 = vmatprep.subr.bf16.mxu0 %v1360_v29  ;;  %v1412_v26 = vcombine.high %v330_v20, %v334_v21  ;;  %v1416_v27 = vcombine.high %v332_v22, %v336_v23  ;;  %v338_v28 = vld [vmem:[%s1854_s9 + $0x2c0] sm:$0xff]  ;;  %v340_v30 = vld [vmem:[%s1854_s9 + $0x2d0] sm:$0xff]  ;;  %v1411_v32 = vcombine.low %v330_v20, %v334_v21  ;;  %v265_v20 = vld [vmem:[%s1854_s9 + $0x78] sm:$0xff] }
  0x6e   : > { %v342_v29 = vld [vmem:[%s1854_s9 + $0x2e0] sm:$0xff]  ;;  %v344_v31 = vld [vmem:[%s1854_s9 + $0x2f0] sm:$0xff]  ;;  %v1415_v33 = vcombine.low %v332_v22, %v336_v23  ;;  %v229_v21 = vld [vmem:[#allocation2 + $0x18] sm:$0xff]  ;;  %v1333_v23 = vcombine.low %v251_v4, %v255_v5 }
  0x6f   : > { %v1420_v34 = vcombine.high %v338_v28, %v342_v29  ;;  %v1424_v35 = vcombine.high %v340_v30, %v344_v31  ;;  %v346_v36 = vld [vmem:[%s1854_s9 + $0x300] sm:$0xff]  ;;  %v348_v38 = vld [vmem:[%s1854_s9 + $0x310] sm:$0xff]  ;;  %v1419_v40 = vcombine.low %v338_v28, %v342_v29  ;;  %v237_v22 = vld [vmem:[#allocation2 + $0x58] sm:$0xff] }
  0x70   : > { %v350_v37 = vld [vmem:[%s1854_s9 + $0x320] sm:$0xff]  ;;  %v356_v46 = vld [vmem:[%s1854_s9 + $0x350] sm:$0xff] }
  0x71   : > { %v354_v44 = vld [vmem:[%s1854_s9 + $0x340] sm:$0xff]  ;;  %v360_v47 = vld [vmem:[%s1854_s9 + $0x370] sm:$0xff] }
  0x72   : > { %v358_v45 = vld [vmem:[%s1854_s9 + $0x360] sm:$0xff]  ;;  %v364_v54 = vld [vmem:[%s1854_s9 + $0x390] sm:$0xff] }
  0x73   : > { %v362_v52 = vld [vmem:[%s1854_s9 + $0x380] sm:$0xff]  ;;  %v368_v55 = vld [vmem:[%s1854_s9 + $0x3b0] sm:$0xff] }
  0x74   : > { %1037 = vmatpush1.bf16.xpose.msra.mxu1 %v1355_v39  ;;  %1123 = vmatpush1.bf16.xpose.msra.mxu0 %v1359_v41  ;;  %v352_v39 = vld [vmem:[%s1854_s9 + $0x330] sm:$0xff]  ;;  %v1423_v41 = vcombine.low %v340_v30, %v344_v31  ;;  %v366_v53 = vld [vmem:[%s1854_s9 + $0x3a0] sm:$0xff]  ;;  %v245_v30 = vpack.c.bf16 %v237_v22, %v229_v21 }
  0x75   : > { %1038 = vmatprep.subr.bf16.mxu1 %v1364_v42  ;;  %1124 = vmatprep.subr.bf16.mxu0 %v1368_v43  ;;  %v1428_v42 = vcombine.high %v346_v36, %v350_v37  ;;  %v1432_v43 = vcombine.high %v348_v38, %v352_v39  ;;  %v370_v60 = vld [vmem:[%s1854_s9 + $0x3c0] sm:$0xff]  ;;  %v372_v62 = vld [vmem:[%s1854_s9 + $0x3d0] sm:$0xff] }
  0x76   : > { %v374_v61 = vld [vmem:[%s1854_s9 + $0x3e0] sm:$0xff]  ;;  %v376_v63 = vld [vmem:[%s1854_s9 + $0x3f0] sm:$0xff] }
  0x77   : > { %v226_v12 = vld [vmem:[#allocation2] sm:$0xff] }
  0x78   : > { %v234_v13 = vld [vmem:[#allocation2 + $0x40] sm:$0xff] }
  0x79   : > { %v230_v14 = vld [vmem:[#allocation2 + $0x20] sm:$0xff] }
  0x7a   : > { %v238_v15 = vld [vmem:[#allocation2 + $0x60] sm:$0xff] }
  0x7c   : > { %1039 = vmatpush1.bf16.xpose.msra.mxu1 %v1363_v48  ;;  %1125 = vmatpush1.bf16.xpose.msra.mxu0 %v1367_v49  ;;  %v1427_v48 = vcombine.low %v346_v36, %v350_v37  ;;  %v1431_v49 = vcombine.low %v348_v38, %v352_v39 }
  0x7d   : > { %1040 = vmatprep.subr.bf16.mxu1 %v1372_v50  ;;  %1126 = vmatprep.subr.bf16.mxu0 %v1376_v51  ;;  %v1436_v50 = vcombine.high %v354_v44, %v358_v45  ;;  %v1440_v51 = vcombine.high %v356_v46, %v360_v47 }
  0x84   : > { %1041 = vmatpush1.bf16.xpose.msra.mxu1 %v1371_v56  ;;  %1127 = vmatpush1.bf16.xpose.msra.mxu0 %v1375_v57  ;;  %v1435_v56 = vcombine.low %v354_v44, %v358_v45  ;;  %v1439_v57 = vcombine.low %v356_v46, %v360_v47 }
  0x85   : > { %1042 = vmatprep.subr.bf16.mxu1 %v1380_v58  ;;  %1128 = vmatprep.subr.bf16.mxu0 %v1384_v59  ;;  %v1444_v58 = vcombine.high %v362_v52, %v366_v53  ;;  %v1448_v59 = vcombine.high %v364_v54, %v368_v55 }
  0x8c   : > { %1043 = vmatpush1.bf16.xpose.msra.mxu1 %v1379_v0  ;;  %1129 = vmatpush1.bf16.xpose.msra.mxu0 %v1383_v1  ;;  %v1443_v0 = vcombine.low %v362_v52, %v366_v53  ;;  %v1447_v1 = vcombine.low %v364_v54, %v368_v55 }
  0x8d   : > { %1044 = vmatprep.subr.bf16.mxu1 %v1388_v2  ;;  %1130 = vmatprep.subr.bf16.mxu0 %v1392_v3  ;;  %v1452_v2 = vcombine.high %v370_v60, %v374_v61  ;;  %v1456_v3 = vcombine.high %v372_v62, %v376_v63 }
  0x94   : > { %1045 = vmatpush1.bf16.xpose.msra.mxu1 %v1387_v8  ;;  %1131 = vmatpush1.bf16.xpose.msra.mxu0 %v1391_v9  ;;  %v1451_v8 = vcombine.low %v370_v60, %v374_v61  ;;  %v1455_v9 = vcombine.low %v372_v62, %v376_v63 }
  0x95   : > { %1046 = vmatprep.subr.bf16.mxu1 %v1396_v10  ;;  %1132 = vmatprep.subr.bf16.mxu0 %v1400_v11  ;;  %v1334_v10 = vcombine.high %v251_v4, %v255_v5  ;;  %v1338_v11 = vcombine.high %v253_v6, %v257_v7 }
  0x9c   : > { %1047 = vmatpush1.bf16.xpose.msra.mxu1 %v1395_v16  ;;  %1133 = vmatpush1.bf16.xpose.msra.mxu0 %v1399_v17  ;;  %v259_v16 = vld [vmem:[%s1854_s9 + $0x48] sm:$0xff] }
  0x9d   : > { %1048 = vmatprep.subr.bf16.mxu1 %v1404_v18  ;;  %1134 = vmatprep.subr.bf16.mxu0 %v1408_v19  ;;  %v263_v17 = vld [vmem:[%s1854_s9 + $0x68] sm:$0xff]  ;;  %v261_v18 = vld [vmem:[%s1854_s9 + $0x58] sm:$0xff]  ;;  %v242_v19 = vpack.c.bf16 %v234_v13, %v226_v12 }
  0x9e   : > { %v1342_v28 = vcombine.high %v259_v16, %v263_v17  ;;  %v1346_v29 = vcombine.high %v261_v18, %v265_v20  ;;  %v1341_v36 = vcombine.low %v259_v16, %v263_v17  ;;  %v1345_v37 = vcombine.low %v261_v18, %v265_v20  ;;  %v315_v16 = vld [vmem:[%s1854_s9 + $0x208] sm:$0xff]  ;;  %v317_v18 = vld [vmem:[%s1854_s9 + $0x218] sm:$0xff] }
  0x9f   : > { %v319_v17 = vld [vmem:[%s1854_s9 + $0x228] sm:$0xff] }
  0xa0   : > { %v1398_v22 = vcombine.high %v315_v16, %v319_v17 }
  0xa4   : > { %1049 = vmatpush1.bf16.xpose.msra.mxu1 %v1403_v24  ;;  %1135 = vmatpush1.bf16.xpose.msra.mxu0 %v1407_v25  ;;  %v246_v24 = vpack.c.bf16 %v238_v15, %v230_v14  ;;  %v233_v25 = vld [vmem:[#allocation2 + $0x38] sm:$0xff] }
  0xa5   : > { %1050 = vmatprep.subr.bf16.mxu1 %v1412_v26  ;;  %1136 = vmatprep.subr.bf16.mxu0 %v1416_v27  ;;  %v241_v26 = vld [vmem:[#allocation2 + $0x78] sm:$0xff]  ;;  %v1337_v27 = vcombine.low %v253_v6, %v257_v7 }
  0xa6   : > { %v249_v31 = vpack.c.bf16 %v241_v26, %v233_v25  ;;  %v327_v25 = vld [vmem:[%s1854_s9 + $0x268] sm:$0xff]  ;;  %v325_v26 = vld [vmem:[%s1854_s9 + $0x258] sm:$0xff] }
  0xac   : > { %1051 = vmatpush1.bf16.xpose.msra.mxu1 %v1411_v32  ;;  %1137 = vmatpush1.bf16.xpose.msra.mxu0 %v1415_v33  ;;  %v267_v32 = vld [vmem:[%s1854_s9 + $0x88] sm:$0xff] }
  0xad   : > { %1052 = vmatprep.subr.bf16.mxu1 %v1420_v34  ;;  %1138 = vmatprep.subr.bf16.mxu0 %v1424_v35  ;;  %v271_v33 = vld [vmem:[%s1854_s9 + $0xa8] sm:$0xff]  ;;  %v269_v34 = vld [vmem:[%s1854_s9 + $0x98] sm:$0xff] }
  0xae   : > { %v273_v35 = vld [vmem:[%s1854_s9 + $0xb8] sm:$0xff]  ;;  %v1350_v38 = vcombine.high %v267_v32, %v271_v33  ;;  %v1349_v44 = vcombine.low %v267_v32, %v271_v33  ;;  %v331_v32 = vld [vmem:[%s1854_s9 + $0x288] sm:$0xff] }
  0xaf   : > { %v1354_v39 = vcombine.high %v269_v34, %v273_v35  ;;  %v1353_v45 = vcombine.low %v269_v34, %v273_v35  ;;  %v335_v33 = vld [vmem:[%s1854_s9 + $0x2a8] sm:$0xff]  ;;  %v333_v34 = vld [vmem:[%s1854_s9 + $0x298] sm:$0xff] }
  0xb0   : > { %v337_v35 = vld [vmem:[%s1854_s9 + $0x2b8] sm:$0xff] }
  0xb4   : > { %1053 = vmatpush1.bf16.xpose.msra.mxu1 %v1419_v40  ;;  %1139 = vmatpush1.bf16.xpose.msra.mxu0 %v1423_v41  ;;  %v275_v40 = vld [vmem:[%s1854_s9 + $0xc8] sm:$0xff] }
  0xb5   : > { %1054 = vmatprep.subr.bf16.mxu1 %v1428_v42  ;;  %1140 = vmatprep.subr.bf16.mxu0 %v1432_v43  ;;  %v279_v41 = vld [vmem:[%s1854_s9 + $0xe8] sm:$0xff]  ;;  %v277_v42 = vld [vmem:[%s1854_s9 + $0xd8] sm:$0xff] }
  0xb6   : > { %v281_v43 = vld [vmem:[%s1854_s9 + $0xf8] sm:$0xff]  ;;  %v1358_v46 = vcombine.high %v275_v40, %v279_v41  ;;  %v1357_v52 = vcombine.low %v275_v40, %v279_v41  ;;  %v339_v40 = vld [vmem:[%s1854_s9 + $0x2c8] sm:$0xff] }
  0xb7   : > { %v1362_v47 = vcombine.high %v277_v42, %v281_v43  ;;  %v1361_v53 = vcombine.low %v277_v42, %v281_v43  ;;  %v343_v41 = vld [vmem:[%s1854_s9 + $0x2e8] sm:$0xff]  ;;  %v341_v42 = vld [vmem:[%s1854_s9 + $0x2d8] sm:$0xff] }
  0xb8   : > { %v345_v43 = vld [vmem:[%s1854_s9 + $0x2f8] sm:$0xff] }
  0xbc   : > { %1055 = vmatpush1.bf16.xpose.msra.mxu1 %v1427_v48  ;;  %1141 = vmatpush1.bf16.xpose.msra.mxu0 %v1431_v49  ;;  %v283_v48 = vld [vmem:[%s1854_s9 + $0x108] sm:$0xff] }
  0xbd   : > { %1056 = vmatprep.subr.bf16.mxu1 %v1436_v50  ;;  %1142 = vmatprep.subr.bf16.mxu0 %v1440_v51  ;;  %v287_v49 = vld [vmem:[%s1854_s9 + $0x128] sm:$0xff]  ;;  %v285_v50 = vld [vmem:[%s1854_s9 + $0x118] sm:$0xff] }
  0xbe   : > { %v289_v51 = vld [vmem:[%s1854_s9 + $0x138] sm:$0xff]  ;;  %v1366_v54 = vcombine.high %v283_v48, %v287_v49  ;;  %v1365_v60 = vcombine.low %v283_v48, %v287_v49  ;;  %v347_v48 = vld [vmem:[%s1854_s9 + $0x308] sm:$0xff] }
  0xbf   : > { %v1370_v55 = vcombine.high %v285_v50, %v289_v51  ;;  %v1369_v61 = vcombine.low %v285_v50, %v289_v51  ;;  %v351_v49 = vld [vmem:[%s1854_s9 + $0x328] sm:$0xff]  ;;  %v349_v50 = vld [vmem:[%s1854_s9 + $0x318] sm:$0xff] }
  0xc0   : > { %v353_v51 = vld [vmem:[%s1854_s9 + $0x338] sm:$0xff] }
  0xc4   : > { %1057 = vmatpush1.bf16.xpose.msra.mxu1 %v1435_v56  ;;  %1143 = vmatpush1.bf16.xpose.msra.mxu0 %v1439_v57  ;;  %v291_v56 = vld [vmem:[%s1854_s9 + $0x148] sm:$0xff] }
  0xc5   : > { %1058 = vmatprep.subr.bf16.mxu1 %v1444_v58  ;;  %1144 = vmatprep.subr.bf16.mxu0 %v1448_v59  ;;  %v295_v57 = vld [vmem:[%s1854_s9 + $0x168] sm:$0xff]  ;;  %v293_v58 = vld [vmem:[%s1854_s9 + $0x158] sm:$0xff] }
  0xc6   : > { %v297_v59 = vld [vmem:[%s1854_s9 + $0x178] sm:$0xff]  ;;  %v1374_v62 = vcombine.high %v291_v56, %v295_v57  ;;  %v1373_v4 = vcombine.low %v291_v56, %v295_v57  ;;  %v355_v56 = vld [vmem:[%s1854_s9 + $0x348] sm:$0xff] }
  0xc7   : > { %v1378_v63 = vcombine.high %v293_v58, %v297_v59  ;;  %v1377_v5 = vcombine.low %v293_v58, %v297_v59  ;;  %v359_v57 = vld [vmem:[%s1854_s9 + $0x368] sm:$0xff]  ;;  %v357_v58 = vld [vmem:[%s1854_s9 + $0x358] sm:$0xff] }
  0xc8   : > { %v361_v59 = vld [vmem:[%s1854_s9 + $0x378] sm:$0xff] }
  0xcc   : > { %1059 = vmatpush1.bf16.xpose.msra.mxu1 %v1443_v0  ;;  %1145 = vmatpush1.bf16.xpose.msra.mxu0 %v1447_v1  ;;  %v299_v0 = vld [vmem:[%s1854_s9 + $0x188] sm:$0xff] }
  0xcd   : > { %1060 = vmatprep.subr.bf16.mxu1 %v1452_v2  ;;  %1146 = vmatprep.subr.bf16.mxu0 %v1456_v3  ;;  %v303_v1 = vld [vmem:[%s1854_s9 + $0x1a8] sm:$0xff]  ;;  %v301_v2 = vld [vmem:[%s1854_s9 + $0x198] sm:$0xff] }
  0xce   : > { %v305_v3 = vld [vmem:[%s1854_s9 + $0x1b8] sm:$0xff]  ;;  %v1382_v6 = vcombine.high %v299_v0, %v303_v1  ;;  %v1381_v12 = vcombine.low %v299_v0, %v303_v1  ;;  %v363_v0 = vld [vmem:[%s1854_s9 + $0x388] sm:$0xff] }
  0xcf   : > { %v1386_v7 = vcombine.high %v301_v2, %v305_v3  ;;  %v1385_v13 = vcombine.low %v301_v2, %v305_v3  ;;  %v367_v1 = vld [vmem:[%s1854_s9 + $0x3a8] sm:$0xff]  ;;  %v365_v2 = vld [vmem:[%s1854_s9 + $0x398] sm:$0xff] }
  0xd0   : > { %v369_v3 = vld [vmem:[%s1854_s9 + $0x3b8] sm:$0xff] }
  0xd4   : > { %1061 = vmatpush1.bf16.xpose.msra.mxu1 %v1451_v8  ;;  %1147 = vmatpush1.bf16.xpose.msra.mxu0 %v1455_v9  ;;  %v307_v8 = vld [vmem:[%s1854_s9 + $0x1c8] sm:$0xff] }
  0xd5   : > { %1073 = vmatprep.subr.bf16.mxu1 %v1334_v10  ;;  %1159 = vmatprep.subr.bf16.mxu0 %v1338_v11  ;;  %v311_v9 = vld [vmem:[%s1854_s9 + $0x1e8] sm:$0xff]  ;;  %v309_v10 = vld [vmem:[%s1854_s9 + $0x1d8] sm:$0xff] }
  0xd6   : > { %v313_v11 = vld [vmem:[%s1854_s9 + $0x1f8] sm:$0xff]  ;;  %v1390_v14 = vcombine.high %v307_v8, %v311_v9  ;;  %v1389_v20 = vcombine.low %v307_v8, %v311_v9  ;;  %v371_v8 = vld [vmem:[%s1854_s9 + $0x3c8] sm:$0xff] }
  0xd7   : > { %v1394_v15 = vcombine.high %v309_v10, %v313_v11  ;;  %v1393_v21 = vcombine.low %v309_v10, %v313_v11  ;;  %v375_v9 = vld [vmem:[%s1854_s9 + $0x3e8] sm:$0xff]  ;;  %v373_v10 = vld [vmem:[%s1854_s9 + $0x3d8] sm:$0xff] }
  0xd8   : > { %v377_v11 = vld [vmem:[%s1854_s9 + $0x3f8] sm:$0xff] }
  0xdb   : > { %1063 = vmatmul.mubr.bf16.vlgmr.msra.gmra.mrb[0].mxu1 %v242_v19  ;;  %1149 = vmatmul.mubr.bf16.vlgmr.msra.gmra.mrb[0].mxu0 %v246_v24  ;;  %v321_v19 = vld [vmem:[%s1854_s9 + $0x238] sm:$0xff]  ;;  %v323_v24 = vld [vmem:[%s1854_s9 + $0x248] sm:$0xff] }
  0xdc   : > { %1074 = vmatpush1.bf16.xpose.msra.mxu1 %v1333_v23  ;;  %1160 = vmatpush1.bf16.xpose.msra.mxu0 %v1337_v27  ;;  %v1402_v23 = vcombine.high %v317_v18, %v321_v19  ;;  %v329_v27 = vld [vmem:[%s1854_s9 + $0x278] sm:$0xff] }
  0xdd   : > { %1075 = vmatprep.subr.bf16.mxu1 %v1342_v28  ;;  %1161 = vmatprep.subr.bf16.mxu0 %v1346_v29  ;;  %v1397_v28 = vcombine.low %v315_v16, %v319_v17  ;;  %v1401_v29 = vcombine.low %v317_v18, %v321_v19  ;;  %v1453_v16 = vcombine.low %v371_v8, %v375_v9  ;;  %v228_v18 = vld [vmem:[#allocation2 + $0x10] sm:$0xff] }
  0xde   : > { %1105 = vmatprep.mubr.bf16.mxu1 %v245_v30  ;;  %1191 = vmatprep.mubr.bf16.mxu0 %v249_v31  ;;  %v1406_v30 = vcombine.high %v323_v24, %v327_v25  ;;  %v1410_v31 = vcombine.high %v325_v26, %v329_v27  ;;  %v1457_v17 = vcombine.low %v373_v10, %v377_v11  ;;  %v236_v19 = vld [vmem:[#allocation2 + $0x50] sm:$0xff] }
  0xe4   : > { %1076 = vmatpush1.bf16.xpose.msra.mxu1 %v1341_v36  ;;  %1162 = vmatpush1.bf16.xpose.msra.mxu0 %v1345_v37  ;;  %v1405_v36 = vcombine.low %v323_v24, %v327_v25  ;;  %v1409_v37 = vcombine.low %v325_v26, %v329_v27  ;;  %v380_v24 = vlaneseq  ;;  %v378_v27 = vld [vmem:[%s223_s25] sm:$0x3] }
  0xe5   : > { %1077 = vmatprep.subr.bf16.mxu1 %v1350_v38  ;;  %1163 = vmatprep.subr.bf16.mxu0 %v1354_v39  ;;  %v1414_v38 = vcombine.high %v331_v32, %v335_v33  ;;  %v1418_v39 = vcombine.high %v333_v34, %v337_v35 }
  0xe6   : > { %v381_v25 = vshrl.u32 %v380_v24, 7 }
  0xe8   : > { %v382_v26 = vsub.s32 0, %v381_v25 }
  0xec   : > { %1078 = vmatpush1.bf16.xpose.msra.mxu1 %v1349_v44  ;;  %1164 = vmatpush1.bf16.xpose.msra.mxu0 %v1353_v45  ;;  %v1413_v44 = vcombine.low %v331_v32, %v335_v33  ;;  %v1417_v45 = vcombine.low %v333_v34, %v337_v35 }
  0xed   : > { %1079 = vmatprep.subr.bf16.mxu1 %v1358_v46  ;;  %1165 = vmatprep.subr.bf16.mxu0 %v1362_v47  ;;  %v1422_v46 = vcombine.high %v339_v40, %v343_v41  ;;  %v1426_v47 = vcombine.high %v341_v42, %v345_v43 }
  0xf4   : > { %1080 = vmatpush1.bf16.xpose.msra.mxu1 %v1357_v52  ;;  %1166 = vmatpush1.bf16.xpose.msra.mxu0 %v1361_v53  ;;  %v1421_v52 = vcombine.low %v339_v40, %v343_v41  ;;  %v1425_v53 = vcombine.low %v341_v42, %v345_v43 }
  0xf5   : > { %1081 = vmatprep.subr.bf16.mxu1 %v1366_v54  ;;  %1167 = vmatprep.subr.bf16.mxu0 %v1370_v55  ;;  %v1430_v54 = vcombine.high %v347_v48, %v351_v49  ;;  %v1434_v55 = vcombine.high %v349_v50, %v353_v51 }
  0xfc   : > { %1082 = vmatpush1.bf16.xpose.msra.mxu1 %v1365_v60  ;;  %1168 = vmatpush1.bf16.xpose.msra.mxu0 %v1369_v61  ;;  %v1429_v60 = vcombine.low %v347_v48, %v351_v49  ;;  %v1433_v61 = vcombine.low %v349_v50, %v353_v51 }
  0xfd   : > { %1083 = vmatprep.subr.bf16.mxu1 %v1374_v62  ;;  %1169 = vmatprep.subr.bf16.mxu0 %v1378_v63  ;;  %v1438_v62 = vcombine.high %v355_v56, %v359_v57  ;;  %v1442_v63 = vcombine.high %v357_v58, %v361_v59 }
 0x104   : > { %1084 = vmatpush1.bf16.xpose.msra.mxu1 %v1373_v4  ;;  %1170 = vmatpush1.bf16.xpose.msra.mxu0 %v1377_v5  ;;  %v1437_v4 = vcombine.low %v355_v56, %v359_v57  ;;  %v1441_v5 = vcombine.low %v357_v58, %v361_v59 }
 0x105   : > { %1085 = vmatprep.subr.bf16.mxu1 %v1382_v6  ;;  %1171 = vmatprep.subr.bf16.mxu0 %v1386_v7  ;;  %v1446_v6 = vcombine.high %v363_v0, %v367_v1  ;;  %v1450_v7 = vcombine.high %v365_v2, %v369_v3 }
 0x10c   : > { %1086 = vmatpush1.bf16.xpose.msra.mxu1 %v1381_v12  ;;  %1172 = vmatpush1.bf16.xpose.msra.mxu0 %v1385_v13  ;;  %v1445_v12 = vcombine.low %v363_v0, %v367_v1  ;;  %v1449_v13 = vcombine.low %v365_v2, %v369_v3 }
 0x10d   : > { %1087 = vmatprep.subr.bf16.mxu1 %v1390_v14  ;;  %1173 = vmatprep.subr.bf16.mxu0 %v1394_v15  ;;  %v1454_v14 = vcombine.high %v371_v8, %v375_v9  ;;  %v1458_v15 = vcombine.high %v373_v10, %v377_v11 }
 0x114   : > { %1088 = vmatpush1.bf16.xpose.msra.mxu1 %v1389_v20  ;;  %1174 = vmatpush1.bf16.xpose.msra.mxu0 %v1393_v21  ;;  %v232_v20 = vld [vmem:[#allocation2 + $0x30] sm:$0xff] }
 0x115   : > { %1089 = vmatprep.subr.bf16.mxu1 %v1398_v22  ;;  %1175 = vmatprep.subr.bf16.mxu0 %v1402_v23  ;;  %v240_v21 = vld [vmem:[#allocation2 + $0x70] sm:$0xff]  ;;  %v244_v22 = vpack.c.bf16 %v236_v19, %v228_v18 }
 0x116   : > { %v248_v23 = vpack.c.bf16 %v240_v21, %v232_v20 }
 0x11c   : > { %1090 = vmatpush1.bf16.xpose.msra.mxu1 %v1397_v28  ;;  %1176 = vmatpush1.bf16.xpose.msra.mxu0 %v1401_v29  ;;  %v386_v28 = vsub.s32 1, %v381_v25  ;;  %v383_v29 = vrot.slane %v378_v27, %v382_v26 }
 0x11d   : > { %1091 = vmatprep.subr.bf16.mxu1 %v1406_v30  ;;  %1177 = vmatprep.subr.bf16.mxu0 %v1410_v31 }
 0x11e   : > { %v387_v30 = vrot.slane %v378_v27, %v386_v28 }
 0x124   : > { %1092 = vmatpush1.bf16.xpose.msra.mxu1 %v1405_v36  ;;  %1178 = vmatpush1.bf16.xpose.msra.mxu0 %v1409_v37 }
 0x125   : > { %1093 = vmatprep.subr.bf16.mxu1 %v1414_v38  ;;  %1179 = vmatprep.subr.bf16.mxu0 %v1418_v39 }
 0x12c   : > { %1094 = vmatpush1.bf16.xpose.msra.mxu1 %v1413_v44  ;;  %1180 = vmatpush1.bf16.xpose.msra.mxu0 %v1417_v45 }
 0x12d   : > { %1095 = vmatprep.subr.bf16.mxu1 %v1422_v46  ;;  %1181 = vmatprep.subr.bf16.mxu0 %v1426_v47 }
 0x134   : > { %1096 = vmatpush1.bf16.xpose.msra.mxu1 %v1421_v52  ;;  %1182 = vmatpush1.bf16.xpose.msra.mxu0 %v1425_v53 }
 0x135   : > { %1097 = vmatprep.subr.bf16.mxu1 %v1430_v54  ;;  %1183 = vmatprep.subr.bf16.mxu0 %v1434_v55 }
 0x13c   : > { %1098 = vmatpush1.bf16.xpose.msra.mxu1 %v1429_v60  ;;  %1184 = vmatpush1.bf16.xpose.msra.mxu0 %v1433_v61 }
 0x13d   : > { %1099 = vmatprep.subr.bf16.mxu1 %v1438_v62  ;;  %1185 = vmatprep.subr.bf16.mxu0 %v1442_v63 }
 0x144   : > { %1100 = vmatpush1.bf16.xpose.msra.mxu1 %v1437_v4  ;;  %1186 = vmatpush1.bf16.xpose.msra.mxu0 %v1441_v5 }
 0x145   : > { %1101 = vmatprep.subr.bf16.mxu1 %v1446_v6  ;;  %1187 = vmatprep.subr.bf16.mxu0 %v1450_v7 }
 0x14c   : > { %1102 = vmatpush1.bf16.xpose.msra.mxu1 %v1445_v12  ;;  %1188 = vmatpush1.bf16.xpose.msra.mxu0 %v1449_v13 }
 0x14d   : > { %1103 = vmatprep.subr.bf16.mxu1 %v1454_v14  ;;  %1189 = vmatprep.subr.bf16.mxu0 %v1458_v15 }
 0x154   : > { %1104 = vmatpush1.bf16.xpose.msra.mxu1 %v1453_v16  ;;  %1190 = vmatpush1.bf16.xpose.msra.mxu0 %v1457_v17 }
 0x15b   : > { %1106 = vmatmul.mubr.bf16.vlgmr.msra.gmra.mrb[0].mxu1 %v244_v22  ;;  %1192 = vmatmul.mubr.bf16.vlgmr.msra.gmra.mrb[0].mxu0 %v248_v23 }
 0x22e   : > { %v1107_v31 = vpop.f32.mrb[0].mxu1  ;;  %v1193_v33 = vpop.f32.mrb[0].mxu0 }
 0x22f   : > { %v1467_v32 = vadd.f32 %v1107_v31, %v383_v29  ;;  %v1109_v34 = vpop.f32.mrb[1].mxu1  ;;  %v1195_v36 = vpop.f32.mrb[1].mxu0 }
 0x230   : > { %v1469_v35 = vadd.f32 %v1109_v34, %v387_v30  ;;  %v1111_v37 = vpop.f32.mrb[2].mxu1  ;;  %v1197_v40 = vpop.f32.mrb[2].mxu0 }
 0x231   : > { %v1468_v38 = vadd.f32 %v1467_v32, %v1193_v33  ;;  %v1471_v39 = vadd.f32 %v1111_v37, %v383_v29  ;;  %v1113_v41 = vpop.f32.mrb[3].mxu1  ;;  %v1199_v44 = vpop.f32.mrb[3].mxu0 }
 0x232   : > { %v1470_v42 = vadd.f32 %v1469_v35, %v1195_v36  ;;  %v1473_v43 = vadd.f32 %v1113_v41, %v387_v30 }
 0x233   : > { %v1202_v45 = vmax.f32 %v1468_v38, 0.0  ;;  %v1472_v46 = vadd.f32 %v1471_v39, %v1197_v40 }
 0x234   : > { %v1203_v47 = vmax.f32 %v1470_v42, 0.0  ;;  %v1474_v48 = vadd.f32 %v1473_v43, %v1199_v44 }
 0x235   : > { %1206 = vst [vmem:[%s218_s5] sm:$0xff] %v1202_v45  ;;  %v1204_v49 = vmax.f32 %v1472_v46, 0.0 }
 0x236   : > { %1207 = vst [vmem:[%s218_s5 + $0x8] sm:$0xff] %v1203_v47  ;;  %v1205_v50 = vmax.f32 %v1474_v48, 0.0 }
 0x237   : > { %1208 = vst [vmem:[%s218_s5 + $0x10] sm:$0xff] %v1204_v49 }
 0x238   : > { %1209 = vst [vmem:[%s218_s5 + $0x18] sm:$0xff] %v1205_v50 }
 0x239   : > { %1618 = shalt.err (!%p1615_p9)
}
 0x23a   : > { %s1619_s8 = scalar_lea.hbm %s1999_s29, 512  ;;  %s1623_s20 = scalar_lea.hbm %s2046_s3, 1024 }
 0x23b   : > { %p1620_p2 = scmp.ne.s32.totalorder %s1999_s29, %s1619_s8  ;;  %p1624_p1 = scmp.lt.u32.totalorder %s1999_s29, %s2046_s3 }
 0x23c   : > { %p1625_p11 = scmp.lt.u32.totalorder %s1623_s20, %s1619_s8  ;;  %p1627_p6 = scmp.lt.u32.totalorder %s1619_s8, %s1999_s29 }
 0x23d   : > { %p1621_p0 = pnand %p1620_p2, %p1798_p12 }
 0x23e   : > { %p1626_p4 = por %p1625_p11, %p1624_p1 }
 0x23f   : > { %p1622_p5 = pneg %p1621_p0 }
 0x240   : > { %p1628_p8 = por %p1627_p6, %p1626_p4 }
 0x242   : > { %p1629_p10 = pnand %p1628_p8, %p1622_p5 }
 0x244   : > { %1632 = shalt.err (!%p1629_p10)
}
 0x245   : > { %s1684_s26 = smov 256   ;;  %s1685_s5 = smov 512  }
 0x246   : > { %s1686_s11 = smov 16  }
 0x247   : > { %1489 = dma.vmem_to_hbm [thread:$0]  (%p1798_p12), %s1994_s10, 512, %s1999_s29, %s1211_s16, %s1684_s26, %s1685_s5, %s1686_s11  }
 0x248 PF: > { %s1239_s27 = sand.u32 1, %s1663_s12   ;;  %p2061_p13 = scmp.ne.s32.totalorder %s2051_s19, 0 }
 0x249   : > { %p2062_p3 = scmp.ge.s32.totalorder %s1675_s15, 2  ;;  %s1240_s28 = scalar_lea.sflag [#allocation4], %s1239_s27 }
 0x24b   : > { %p1500_p7 = pnand %p2062_p3, %p2061_p13 }
 0x24d   : > { %1658 = dma.done.wait (!%p1500_p7), %s1240_s28, 512  }
 0x24e   : > { %1660 = vsyncadd (!%p1500_p7), %s1240_s28, 4294966784  ;;  %p17_p9 = scmp.ge.s32.totalorder %s1763_s24, 4   ;;  %s2063_s12 = smov %s1667_s13 }
 0x24f   : > { %s2064_s13 = smov %s1671_s14  ;;  %s2065_s14 = smov %s1794_s17 }
 0x250   : > { %s2066_s15 = smov %s1763_s24  ;;  %19 = sbr.rel (!%p17_p9) target bundleno = 6 (0x6), region = 85 }
 0x257   :  { %1245 = vsyncpa [#allocation3], 1 }
 0x258   :  { %1247 = vsyncpa [#allocation3 + $0x1], 1 }
 0x259   :  { %1248 = vsyncpa [#allocation6], 1 }
 0x25a   :  { %1250 = vsyncpa [#allocation6 + $0x1], 1 }
 0x25b   :  { %1251 = vsyncpa [#allocation4], 1 }
 0x25c   :  { %1253 = vsyncpa [#allocation4 + $0x1], 1 }

</bundles_post_ra>
